<compile_context>
chip_gen: v5e
topology: v5e:2x2
jax: 0.10.0
libtpu: 0.0.40
codegen_flags: <defaults>
</compile_context>

<pallas_src>
import functools

import jax
import jax.numpy as jnp
from jax.experimental import pallas as pl
from jax.experimental.pallas import tpu as pltpu


# ------------------------------ helpers ----------------------------------- #

def _round_up(x: int, m: int) -> int:
    return (x + m - 1) // m * m


def _cdiv(a: int, b: int) -> int:
    return -(-a // b)


def _vmem_budgets():
    """(plan_budget_bytes, vmem_limit_bytes) derived from the local chip.

    Plan against 75% of physical VMEM, grant 87.5% via vmem_limit_bytes:
      v5e/v6e (128 MiB): plan 96 MiB, limit 112 MiB
      v7x     ( 64 MiB): plan 48 MiB, limit  56 MiB
    Falls back to a 64 MiB assumption (safe on every generation).
    """
    cap = 64 * 1024 * 1024
    try:
        info = pltpu.get_tpu_info()
        cap = int(getattr(info, "vmem_capacity_bytes", cap)) or cap
    except Exception:
        pass
    return (cap * 3) // 4, (cap * 7) // 8


def _pick_tile_b(kpads, npads, act_itemsize, w_itemsize, budget_bytes):
    """Largest batch tile whose double-buffered activations + single-buffered
    resident weights/biases + live f32 intermediates fit the VMEM budget."""
    sublane = max(8, 32 // act_itemsize)
    # Constant (grid-invariant) blocks: weights in compute dtype, biases f32
    # ((1, N) pads to 8 sublanes internally). Buffered(1) => counted once.
    const_bytes = sum(k * n for k, n in zip(kpads, npads)) * w_itemsize
    const_bytes += sum(8 * n * 4 for n in npads)
    max_n = max(npads)

    for tile_b in (2048, 1024, 512, 256, 128, 64, 32, 16, 8):
        if tile_b < sublane:
            continue
        act_bytes = (
            2 * tile_b * kpads[0] * act_itemsize   # double-buffered input tile
            + 2 * tile_b * npads[-1] * 4           # double-buffered f32 output tile
            + 2 * tile_b * max_n * 4               # live f32 intermediates (y / pre-ReLU)
            + tile_b * max_n * act_itemsize        # live compute-dtype activation h
        )
        if const_bytes + act_bytes <= budget_bytes:
            return tile_b

    # TODO(synk): add a layer-streaming path (second "arbitrary" grid axis over
    # layers with weight BlockSpec((1, K, N)) and a VMEM activation carry /
    # pltpu.emit_pipeline) for MLPs whose stacked weights exceed per-core VMEM.
    raise ValueError(
        "MLP resident weights (%.1f MiB) do not fit the VMEM budget (%.1f MiB) "
        "even at the smallest batch tile; a layer-streaming kernel is required."
        % (const_bytes / 2**20, budget_bytes / 2**20))


def _plan_batch_tiling(batch, cap_tile, sublane):
    """Divisor-aware batch tiling; >=2 tiles when the batch allows it (v7x
    megacore), rows rounded to the compute dtype's sublane packing."""
    batch_r = _round_up(max(batch, 1), sublane)
    n_tiles = _cdiv(batch_r, cap_tile)
    if n_tiles == 1 and batch >= 2 * sublane:
        n_tiles = 2                      # let ("parallel",) use both v7x TCs
    tile_b = _round_up(_cdiv(batch_r, n_tiles), sublane)
    n_tiles = _cdiv(batch_r, tile_b)
    return tile_b, n_tiles * tile_b


# ----------------------------- Pallas kernel ------------------------------ #

def _mlp_fused_kernel(*refs, nlayers: int, compute_dtype):
    """Whole MLP on one batch tile.

    refs = (x, w_0..w_{L-1}, b_0..b_{L-1}, o)
      x   : (TILE_B, Kpad0)      compute_dtype, zero-padded lanes
      w_l : (Kpad_l, Npad_l)     compute_dtype, pre-transposed, zero-padded
      b_l : (1, Npad_l)          float32, zero-padded
      o   : (TILE_B, Npad_last)  float32
    """
    x_ref = refs[0]
    w_refs = refs[1:1 + nlayers]
    b_refs = refs[1 + nlayers:1 + 2 * nlayers]
    o_ref = refs[1 + 2 * nlayers]

    h = x_ref[...]
    y = None
    # Static (unrolled) layer loop: the LLO scheduler overlaps each layer's MXU
    # push with the previous layer's f32 bias/ReLU epilogue.
    for l in range(nlayers):
        y = jnp.dot(h, w_refs[l][...], preferred_element_type=jnp.float32)
        y = y + b_refs[l][...]                    # (1, N) broadcast, f32 epilogue
        if l < nlayers - 1:
            h = jnp.maximum(y, 0.0).astype(compute_dtype)   # hidactive = ReLU
    o_ref[...] = y.astype(o_ref.dtype)            # single lane-dense store


def mlp_forward(x_pad, w_list, b_list, *, tile_b, compute_dtype,
                vmem_limit_bytes, single_buffer_consts=True):
    bpad, kpad0 = x_pad.shape
    nlayers = len(w_list)
    npad_last = w_list[-1].shape[1]

    def const_spec(arr):
        # Grid-invariant block; single-buffer it (never re-fetched).
        if single_buffer_consts:
            return pl.BlockSpec(arr.shape, lambda i: (0,) * arr.ndim,
                                pipeline_mode=pl.Buffered(1))
        return pl.BlockSpec(arr.shape, lambda i: (0,) * arr.ndim)

    in_specs = [pl.BlockSpec((tile_b, kpad0), lambda i: (i, 0))]
    in_specs += [const_spec(w) for w in w_list]
    in_specs += [const_spec(b) for b in b_list]

    kernel = functools.partial(_mlp_fused_kernel, nlayers=nlayers,
                               compute_dtype=compute_dtype)
    return pl.pallas_call(
        kernel,
        out_shape=jax.ShapeDtypeStruct((bpad, npad_last), jnp.float32),
        grid_spec=pltpu.PrefetchScalarGridSpec(
            num_scalar_prefetch=0,
            grid=(bpad // tile_b,),
            in_specs=in_specs,
            out_specs=pl.BlockSpec((tile_b, npad_last), lambda i: (i, 0)),
        ),
        compiler_params=pltpu.CompilerParams(
            dimension_semantics=("parallel",),     # batch tiles split across TCs
            vmem_limit_bytes=int(vmem_limit_bytes),
        ),
    )(x_pad, *w_list, *b_list)


# --------------------------- Parameter creation ---------------------------- #

def make_normed_linear_params(key, in_features, out_features,
                              scale=1.0, norm=True):
    """nn.Linear default init, then NormedLinear row normalization.

    Weight stored PyTorch-style as (out, in); bias as (out,). float32.
    """
    kw, kb = jax.random.split(key)
    bound = 1.0 / jnp.sqrt(jnp.float32(in_features))
    w = jax.random.uniform(kw, (out_features, in_features),
                           minval=-bound, maxval=bound, dtype=jnp.float32)
    b = jax.random.uniform(kb, (out_features,),
                           minval=-bound, maxval=bound, dtype=jnp.float32)
    if norm:
        row_norm = jnp.linalg.norm(w, ord=2, axis=1, keepdims=True)
        w = w * (scale / row_norm)
    return w, b


class MLPPallas:
    """JAX/Pallas port of the PyTorch MLP module (fused single-kernel forward)."""

    def __init__(self, insize, nhidlayer, outsize, hidsize, norm=True,
                 compute_dtype=jnp.bfloat16, key=None):
        if key is None:
            key = jax.random.PRNGKey(0)
        self.insize = insize
        self.nhidlayer = nhidlayer
        self.outsize = outsize
        self.hidsize = hidsize
        self.compute_dtype = compute_dtype

        in_sizes = [insize] + [hidsize] * nhidlayer
        out_sizes = [hidsize] * nhidlayer + [outsize]
        # Per-layer lane-dense padded widths (no uniform FxF over-padding).
        self.kpads = [_round_up(k, 128) for k in in_sizes]
        self.npads = [_round_up(n, 128) for n in out_sizes]

        nlayers = len(in_sizes)
        keys = jax.random.split(key, nlayers)

        self.raw_params = []       # unpadded PyTorch-layout params (reference)
        self.w_list, self.b_list = [], []
        for k, fi, fo, kp, np_ in zip(keys, in_sizes, out_sizes,
                                      self.kpads, self.npads):
            w, b = make_normed_linear_params(k, fi, fo, norm=norm)
            self.raw_params.append((w, b))
            # Pre-transpose to (in, out), zero-pad to (Kpad, Npad). Zero padding
            # keeps padded output lanes exactly 0 through every layer.
            wt = jnp.zeros((kp, np_), jnp.float32).at[:fi, :fo].set(w.T)
            bp = jnp.zeros((1, np_), jnp.float32).at[0, :fo].set(b)
            self.w_list.append(wt.astype(compute_dtype))
            self.b_list.append(bp)                        # bias stays f32

    def __call__(self, x):
        batch, fin = x.shape
        assert fin == self.insize
        act_itemsize = jnp.dtype(self.compute_dtype).itemsize
        sublane = max(8, 32 // act_itemsize)

        plan_budget, vmem_limit = _vmem_budgets()
        cap_tile = _pick_tile_b(self.kpads, self.npads,
                                act_itemsize, act_itemsize, plan_budget)
        tile_b, batch_pad = _plan_batch_tiling(batch, cap_tile, sublane)

        # Zero-pad batch (sublanes) and features (lanes) for dense vreg/MXU use.
        x_pad = jnp.zeros((batch_pad, self.kpads[0]), self.compute_dtype)
        x_pad = x_pad.at[:batch, :fin].set(x.astype(self.compute_dtype))

        try:
            out = mlp_forward(x_pad, self.w_list, self.b_list, tile_b=tile_b,
                              compute_dtype=self.compute_dtype,
                              vmem_limit_bytes=vmem_limit,
                              single_buffer_consts=True)
        except Exception:
            # Fallback if this Pallas/Mosaic build rejects Buffered(1): use the
            # default double-buffered constant blocks (costs extra weight VMEM).
            out = mlp_forward(x_pad, self.w_list, self.b_list, tile_b=tile_b,
                              compute_dtype=self.compute_dtype,
                              vmem_limit_bytes=vmem_limit,
                              single_buffer_consts=False)
        return out[:batch, :self.outsize]

    @property
    def output_shape(self):
        return (self.outsize,)


# ------------------------------ Reference ---------------------------------- #

def reference_forward(x, raw_params, compute_dtype):
    """Dtype-emulated reference: weights/activations in compute_dtype, f32
    accumulation, f32 bias/ReLU epilogue (matches the kernel semantics)."""
    nlayers = len(raw_params)
    h = x.astype(compute_dtype)
    y = None
    for i, (w, b) in enumerate(raw_params):
        y = jnp.dot(h, w.T.astype(compute_dtype),
                    preferred_element_type=jnp.float32) + b
        if i < nlayers - 1:
            h = jnp.maximum(y, 0.0).astype(compute_dtype)
    return y


# --------------------------------- Main ------------------------------------ #

if __name__ == "__main__":
    key = jax.random.PRNGKey(0)
    k_params, k_x = jax.random.split(key)

    batch, insize, hidsize, nhidlayer, outsize = 2, 16, 32, 2, 8
    x = jax.random.normal(k_x, (batch, insize), dtype=jnp.float32)

    # bf16 fast path (default): bf16 weights/activations, f32 accumulation.
    mlp_bf16 = MLPPallas(insize=insize, nhidlayer=nhidlayer, outsize=outsize,
                         hidsize=hidsize, norm=True,
                         compute_dtype=jnp.bfloat16, key=k_params)
    y_bf16 = mlp_bf16(x)
    jax.block_until_ready(y_bf16)
    assert y_bf16.shape == (batch, outsize), y_bf16.shape
    ref_bf16 = reference_forward(x, mlp_bf16.raw_params, jnp.bfloat16)
    assert jnp.allclose(y_bf16, ref_bf16, atol=5e-3, rtol=5e-3), (
        float(jnp.max(jnp.abs(y_bf16 - ref_bf16))))

    # f32 path: numerically faithful to the PyTorch float32 module.
    mlp_f32 = MLPPallas(insize=insize, nhidlayer=nhidlayer, outsize=outsize,
                        hidsize=hidsize, norm=True,
                        compute_dtype=jnp.float32, key=k_params)
    y_f32 = mlp_f32(x)
    jax.block_until_ready(y_f32)
    assert y_f32.shape == (batch, outsize), y_f32.shape
    ref_f32 = reference_forward(x, mlp_f32.raw_params, jnp.float32)
    assert jnp.allclose(y_f32, ref_f32, atol=1e-4, rtol=1e-4), (
        float(jnp.max(jnp.abs(y_f32 - ref_f32))))

    print("KERNEL_OK")
</pallas_src>

<mosaic_0001>
module attributes {stable_mosaic.version = 11 : i64} {
  func.func @_mlp_fused_kernel(%arg0: i32, %arg1: memref<16x128xbf16, #tpu.memory_space<vmem>>, %arg2: memref<128x128xbf16, #tpu.memory_space<vmem>>, %arg3: memref<128x128xbf16, #tpu.memory_space<vmem>>, %arg4: memref<128x128xbf16, #tpu.memory_space<vmem>>, %arg5: memref<1x128xf32, #tpu.memory_space<vmem>>, %arg6: memref<1x128xf32, #tpu.memory_space<vmem>>, %arg7: memref<1x128xf32, #tpu.memory_space<vmem>>, %arg8: memref<16x128xf32, #tpu.memory_space<vmem>>) attributes {dimension_semantics = [#tpu.dimension_semantics<parallel>], iteration_bounds = array<i64: 1>, scalar_prefetch = 0 : i64, scratch_operands = 0 : i64, tpu.core_type = #tpu.core_type<tc>, window_params = [{transform_indices = @transform_0, window_bounds = array<i64: 16, 128>}, {pipeline_mode = #tpu.pipeline_mode<synchronous>, transform_indices = @transform_1, window_bounds = array<i64: 128, 128>}, {pipeline_mode = #tpu.pipeline_mode<synchronous>, transform_indices = @transform_2, window_bounds = array<i64: 128, 128>}, {pipeline_mode = #tpu.pipeline_mode<synchronous>, transform_indices = @transform_3, window_bounds = array<i64: 128, 128>}, {pipeline_mode = #tpu.pipeline_mode<synchronous>, transform_indices = @transform_4, window_bounds = array<i64: 1, 128>}, {pipeline_mode = #tpu.pipeline_mode<synchronous>, transform_indices = @transform_5, window_bounds = array<i64: 1, 128>}, {pipeline_mode = #tpu.pipeline_mode<synchronous>, transform_indices = @transform_6, window_bounds = array<i64: 1, 128>}, {transform_indices = @transform_7, window_bounds = array<i64: 16, 128>}]} {
    %c0 = arith.constant 0 : index
    %c0_0 = arith.constant 0 : index
    %0 = vector.load %arg1[%c0, %c0_0] : memref<16x128xbf16, #tpu.memory_space<vmem>>, vector<16x128xbf16>
    %c0_1 = arith.constant 0 : index
    %c0_2 = arith.constant 0 : index
    %1 = vector.load %arg2[%c0_1, %c0_2] : memref<128x128xbf16, #tpu.memory_space<vmem>>, vector<128x128xbf16>
    %cst = arith.constant dense<0.000000e+00> : vector<16x128xf32>
    %2 = tpu.matmul %0, %1, %cst {dimension_numbers = #tpu.dot_dimension_numbers<[1], [0], [0], [1], [0, 0, 1, 1], [], []>} : vector<16x128xbf16>, vector<128x128xbf16>, vector<16x128xf32> -> vector<16x128xf32>
    %c0_3 = arith.constant 0 : index
    %c0_4 = arith.constant 0 : index
    %3 = vector.load %arg5[%c0_3, %c0_4] : memref<1x128xf32, #tpu.memory_space<vmem>>, vector<1x128xf32>
    %4 = vector.broadcast %3 : vector<1x128xf32> to vector<16x128xf32>
    %5 = arith.addf %2, %4 : vector<16x128xf32>
    %cst_5 = arith.constant 0.000000e+00 : f32
    %6 = vector.broadcast %cst_5 : f32 to vector<16x128xf32>
    %7 = arith.maximumf %5, %6 : vector<16x128xf32>
    %8 = arith.truncf %7 : vector<16x128xf32> to vector<16x128xbf16>
    %c0_6 = arith.constant 0 : index
    %c0_7 = arith.constant 0 : index
    %9 = vector.load %arg3[%c0_6, %c0_7] : memref<128x128xbf16, #tpu.memory_space<vmem>>, vector<128x128xbf16>
    %cst_8 = arith.constant dense<0.000000e+00> : vector<16x128xf32>
    %10 = tpu.matmul %8, %9, %cst_8 {dimension_numbers = #tpu.dot_dimension_numbers<[1], [0], [0], [1], [0, 0, 1, 1], [], []>} : vector<16x128xbf16>, vector<128x128xbf16>, vector<16x128xf32> -> vector<16x128xf32>
    %c0_9 = arith.constant 0 : index
    %c0_10 = arith.constant 0 : index
    %11 = vector.load %arg6[%c0_9, %c0_10] : memref<1x128xf32, #tpu.memory_space<vmem>>, vector<1x128xf32>
    %12 = vector.broadcast %11 : vector<1x128xf32> to vector<16x128xf32>
    %13 = arith.addf %10, %12 : vector<16x128xf32>
    %cst_11 = arith.constant 0.000000e+00 : f32
    %14 = vector.broadcast %cst_11 : f32 to vector<16x128xf32>
    %15 = arith.maximumf %13, %14 : vector<16x128xf32>
    %16 = arith.truncf %15 : vector<16x128xf32> to vector<16x128xbf16>
    %c0_12 = arith.constant 0 : index
    %c0_13 = arith.constant 0 : index
    %17 = vector.load %arg4[%c0_12, %c0_13] : memref<128x128xbf16, #tpu.memory_space<vmem>>, vector<128x128xbf16>
    %cst_14 = arith.constant dense<0.000000e+00> : vector<16x128xf32>
    %18 = tpu.matmul %16, %17, %cst_14 {dimension_numbers = #tpu.dot_dimension_numbers<[1], [0], [0], [1], [0, 0, 1, 1], [], []>} : vector<16x128xbf16>, vector<128x128xbf16>, vector<16x128xf32> -> vector<16x128xf32>
    %c0_15 = arith.constant 0 : index
    %c0_16 = arith.constant 0 : index
    %19 = vector.load %arg7[%c0_15, %c0_16] : memref<1x128xf32, #tpu.memory_space<vmem>>, vector<1x128xf32>
    %20 = vector.broadcast %19 : vector<1x128xf32> to vector<16x128xf32>
    %21 = arith.addf %18, %20 : vector<16x128xf32>
    %c0_17 = arith.constant 0 : index
    %c0_18 = arith.constant 0 : index
    %22 = vector.load %arg8[%c0_17, %c0_18] : memref<16x128xf32, #tpu.memory_space<vmem>>, vector<16x128xf32>
    tpu.vector_store %arg8[%c0_17, %c0_18], %21 {strides = array<i32>} : memref<16x128xf32, #tpu.memory_space<vmem>>, vector<16x128xf32>,
    return
  }
  func.func @transform_0(%arg0: i32) -> (i32, i32) {
    %c0_i32 = arith.constant 0 : i32
    %c0_i32_0 = arith.constant 0 : i32
    return %arg0, %c0_i32 : i32, i32
  }
  func.func @transform_1(%arg0: i32) -> (i32, i32) {
    %c0_i32 = arith.constant 0 : i32
    %c0_i32_0 = arith.constant 0 : i32
    %c0_i32_1 = arith.constant 0 : i32
    return %c0_i32, %c0_i32_0 : i32, i32
  }
  func.func @transform_2(%arg0: i32) -> (i32, i32) {
    %c0_i32 = arith.constant 0 : i32
    %c0_i32_0 = arith.constant 0 : i32
    %c0_i32_1 = arith.constant 0 : i32
    return %c0_i32, %c0_i32_0 : i32, i32
  }
  func.func @transform_3(%arg0: i32) -> (i32, i32) {
    %c0_i32 = arith.constant 0 : i32
    %c0_i32_0 = arith.constant 0 : i32
    %c0_i32_1 = arith.constant 0 : i32
    return %c0_i32, %c0_i32_0 : i32, i32
  }
  func.func @transform_4(%arg0: i32) -> (i32, i32) {
    %c0_i32 = arith.constant 0 : i32
    %c0_i32_0 = arith.constant 0 : i32
    %c0_i32_1 = arith.constant 0 : i32
    return %c0_i32, %c0_i32_0 : i32, i32
  }
  func.func @transform_5(%arg0: i32) -> (i32, i32) {
    %c0_i32 = arith.constant 0 : i32
    %c0_i32_0 = arith.constant 0 : i32
    %c0_i32_1 = arith.constant 0 : i32
    return %c0_i32, %c0_i32_0 : i32, i32
  }
  func.func @transform_6(%arg0: i32) -> (i32, i32) {
    %c0_i32 = arith.constant 0 : i32
    %c0_i32_0 = arith.constant 0 : i32
    %c0_i32_1 = arith.constant 0 : i32
    return %c0_i32, %c0_i32_0 : i32, i32
  }
  func.func @transform_7(%arg0: i32) -> (i32, i32) {
    %c0_i32 = arith.constant 0 : i32
    %c0_i32_0 = arith.constant 0 : i32
    return %arg0, %c0_i32 : i32, i32
  }
}

module attributes {stable_mosaic.version = 11 : i64} {
  func.func @_mlp_fused_kernel(%arg0: i32, %arg1: memref<16x128xbf16, #tpu.memory_space<vmem>>, %arg2: memref<128x128xbf16, #tpu.memory_space<vmem>>, %arg3: memref<128x128xbf16, #tpu.memory_space<vmem>>, %arg4: memref<128x128xbf16, #tpu.memory_space<vmem>>, %arg5: memref<1x128xf32, #tpu.memory_space<vmem>>, %arg6: memref<1x128xf32, #tpu.memory_space<vmem>>, %arg7: memref<1x128xf32, #tpu.memory_space<vmem>>, %arg8: memref<16x128xf32, #tpu.memory_space<vmem>>) attributes {dimension_semantics = [#tpu.dimension_semantics<parallel>], iteration_bounds = array<i64: 1>, scalar_prefetch = 0 : i64, scratch_operands = 0 : i64, tpu.core_type = #tpu.core_type<tc>, window_params = [{transform_indices = @transform_0, window_bounds = array<i64: 16, 128>}, {pipeline_mode = #tpu.pipeline_mode<synchronous>, transform_indices = @transform_1, window_bounds = array<i64: 128, 128>}, {pipeline_mode = #tpu.pipeline_mode<synchronous>, transform_indices = @transform_2, window_bounds = array<i64: 128, 128>}, {pipeline_mode = #tpu.pipeline_mode<synchronous>, transform_indices = @transform_3, window_bounds = array<i64: 128, 128>}, {pipeline_mode = #tpu.pipeline_mode<synchronous>, transform_indices = @transform_4, window_bounds = array<i64: 1, 128>}, {pipeline_mode = #tpu.pipeline_mode<synchronous>, transform_indices = @transform_5, window_bounds = array<i64: 1, 128>}, {pipeline_mode = #tpu.pipeline_mode<synchronous>, transform_indices = @transform_6, window_bounds = array<i64: 1, 128>}, {transform_indices = @transform_7, window_bounds = array<i64: 16, 128>}]} {
    %c0 = arith.constant 0 : index
    %c0_0 = arith.constant 0 : index
    %0 = vector.load %arg1[%c0, %c0_0] : memref<16x128xbf16, #tpu.memory_space<vmem>>, vector<16x128xbf16>
    %c0_1 = arith.constant 0 : index
    %c0_2 = arith.constant 0 : index
    %1 = vector.load %arg2[%c0_1, %c0_2] : memref<128x128xbf16, #tpu.memory_space<vmem>>, vector<128x128xbf16>
    %cst = arith.constant dense<0.000000e+00> : vector<16x128xf32>
    %2 = tpu.matmul %0, %1, %cst {dimension_numbers = #tpu.dot_dimension_numbers<[1], [0], [0], [1], [0, 0, 1, 1], [], []>} : vector<16x128xbf16>, vector<128x128xbf16>, vector<16x128xf32> -> vector<16x128xf32>
    %c0_3 = arith.constant 0 : index
    %c0_4 = arith.constant 0 : index
    %3 = vector.load %arg5[%c0_3, %c0_4] : memref<1x128xf32, #tpu.memory_space<vmem>>, vector<1x128xf32>
    %4 = vector.broadcast %3 : vector<1x128xf32> to vector<16x128xf32>
    %5 = arith.addf %2, %4 : vector<16x128xf32>
    %cst_5 = arith.constant 0.000000e+00 : f32
    %6 = vector.broadcast %cst_5 : f32 to vector<16x128xf32>
    %7 = arith.maximumf %5, %6 : vector<16x128xf32>
    %8 = arith.truncf %7 : vector<16x128xf32> to vector<16x128xbf16>
    %c0_6 = arith.constant 0 : index
    %c0_7 = arith.constant 0 : index
    %9 = vector.load %arg3[%c0_6, %c0_7] : memref<128x128xbf16, #tpu.memory_space<vmem>>, vector<128x128xbf16>
    %cst_8 = arith.constant dense<0.000000e+00> : vector<16x128xf32>
    %10 = tpu.matmul %8, %9, %cst_8 {dimension_numbers = #tpu.dot_dimension_numbers<[1], [0], [0], [1], [0, 0, 1, 1], [], []>} : vector<16x128xbf16>, vector<128x128xbf16>, vector<16x128xf32> -> vector<16x128xf32>
    %c0_9 = arith.constant 0 : index
    %c0_10 = arith.constant 0 : index
    %11 = vector.load %arg6[%c0_9, %c0_10] : memref<1x128xf32, #tpu.memory_space<vmem>>, vector<1x128xf32>
    %12 = vector.broadcast %11 : vector<1x128xf32> to vector<16x128xf32>
    %13 = arith.addf %10, %12 : vector<16x128xf32>
    %cst_11 = arith.constant 0.000000e+00 : f32
    %14 = vector.broadcast %cst_11 : f32 to vector<16x128xf32>
    %15 = arith.maximumf %13, %14 : vector<16x128xf32>
    %16 = arith.truncf %15 : vector<16x128xf32> to vector<16x128xbf16>
    %c0_12 = arith.constant 0 : index
    %c0_13 = arith.constant 0 : index
    %17 = vector.load %arg4[%c0_12, %c0_13] : memref<128x128xbf16, #tpu.memory_space<vmem>>, vector<128x128xbf16>
    %cst_14 = arith.constant dense<0.000000e+00> : vector<16x128xf32>
    %18 = tpu.matmul %16, %17, %cst_14 {dimension_numbers = #tpu.dot_dimension_numbers<[1], [0], [0], [1], [0, 0, 1, 1], [], []>} : vector<16x128xbf16>, vector<128x128xbf16>, vector<16x128xf32> -> vector<16x128xf32>
    %c0_15 = arith.constant 0 : index
    %c0_16 = arith.constant 0 : index
    %19 = vector.load %arg7[%c0_15, %c0_16] : memref<1x128xf32, #tpu.memory_space<vmem>>, vector<1x128xf32>
    %20 = vector.broadcast %19 : vector<1x128xf32> to vector<16x128xf32>
    %21 = arith.addf %18, %20 : vector<16x128xf32>
    %c0_17 = arith.constant 0 : index
    %c0_18 = arith.constant 0 : index
    %22 = vector.load %arg8[%c0_17, %c0_18] : memref<16x128xf32, #tpu.memory_space<vmem>>, vector<16x128xf32>
    tpu.vector_store %arg8[%c0_17, %c0_18], %21 {strides = array<i32>} : memref<16x128xf32, #tpu.memory_space<vmem>>, vector<16x128xf32>,
    return
  }
  func.func @transform_0(%arg0: i32) -> (i32, i32) {
    %c0_i32 = arith.constant 0 : i32
    %c0_i32_0 = arith.constant 0 : i32
    return %arg0, %c0_i32 : i32, i32
  }
  func.func @transform_1(%arg0: i32) -> (i32, i32) {
    %c0_i32 = arith.constant 0 : i32
    %c0_i32_0 = arith.constant 0 : i32
    %c0_i32_1 = arith.constant 0 : i32
    return %c0_i32, %c0_i32_0 : i32, i32
  }
  func.func @transform_2(%arg0: i32) -> (i32, i32) {
    %c0_i32 = arith.constant 0 : i32
    %c0_i32_0 = arith.constant 0 : i32
    %c0_i32_1 = arith.constant 0 : i32
    return %c0_i32, %c0_i32_0 : i32, i32
  }
  func.func @transform_3(%arg0: i32) -> (i32, i32) {
    %c0_i32 = arith.constant 0 : i32
    %c0_i32_0 = arith.constant 0 : i32
    %c0_i32_1 = arith.constant 0 : i32
    return %c0_i32, %c0_i32_0 : i32, i32
  }
  func.func @transform_4(%arg0: i32) -> (i32, i32) {
    %c0_i32 = arith.constant 0 : i32
    %c0_i32_0 = arith.constant 0 : i32
    %c0_i32_1 = arith.constant 0 : i32
    return %c0_i32, %c0_i32_0 : i32, i32
  }
  func.func @transform_5(%arg0: i32) -> (i32, i32) {
    %c0_i32 = arith.constant 0 : i32
    %c0_i32_0 = arith.constant 0 : i32
    %c0_i32_1 = arith.constant 0 : i32
    return %c0_i32, %c0_i32_0 : i32, i32
  }
  func.func @transform_6(%arg0: i32) -> (i32, i32) {
    %c0_i32 = arith.constant 0 : i32
    %c0_i32_0 = arith.constant 0 : i32
    %c0_i32_1 = arith.constant 0 : i32
    return %c0_i32, %c0_i32_0 : i32, i32
  }
  func.func @transform_7(%arg0: i32) -> (i32, i32) {
    %c0_i32 = arith.constant 0 : i32
    %c0_i32_0 = arith.constant 0 : i32
    return %arg0, %c0_i32 : i32, i32
  }
}

</mosaic_0001>

<bundles_post_ra>
// kernel: tpu_custom_call.1
= control target key start
LH: loop header
LB: loop body
LE: loop exit
PB: predicated region body
PF: predicated region fallthrough
CT: control target
= control target key end

     0   :  { %12 = vsyncpa [#allocation3], 0  ;;  %s711_s0 = inlined_call_operand.hbm [shape: bf16[16,128], index: 0, kind: input, shape index: {}]   ;;  %s712_s1 = inlined_call_operand.hbm [shape: bf16[128,128], index: 1, kind: input, shape index: {}]   ;;  %s713_s2 = inlined_call_operand.hbm [shape: bf16[128,128], index: 2, kind: input, shape index: {}]   ;;  %s714_s3 = inlined_call_operand.hbm [shape: bf16[128,128], index: 3, kind: input, shape index: {}]   ;;  %s715_s4 = inlined_call_operand.vmem [shape: f32[1,128], index: 4, kind: input, shape index: {}]   ;;  %s716_s5 = inlined_call_operand.vmem [shape: f32[1,128], index: 5, kind: input, shape index: {}]   ;;  %s717_s6 = inlined_call_operand.vmem [shape: f32[1,128], index: 6, kind: input, shape index: {}]   ;;  %s718_s7 = inlined_call_operand.hbm [shape: f32[16,128], index: 7, kind: output, shape index: {}]  }
   0x1   :  { %13 = vsyncpa [#allocation6], 0 }
   0x2   :  { %14 = vsyncpa [#allocation9], 0 }
   0x3   :  { %15 = vsyncpa [#allocation4], 0  ;;  %s33_s26 = sshll.u32 %s712_s1, 4  ;;  %s638_s27 = smov [#allocation5]   ;;  %s34_s26 = int_to_ptr.hbm [resolvable:$true] %s33_s26 }
   0x4   :  { %s35_s28 = sshll.u32 %s638_s27, 4  ;;  %s20_s8 = sshll.u32 %s711_s0, 4  ;;  %s36_s28 = int_to_ptr.vmem [resolvable:$true] %s35_s28  ;;  %s21_s8 = int_to_ptr.hbm [resolvable:$true] %s20_s8 }
   0x5   :  { %s639_s9 = smov 64   ;;  %s640_s10 = smov 4  }
   0x6   :  { %41 = dma.hbm_to_vmem [thread:$0]  %s34_s26, 1024, %s36_s28, [#allocation6], %s639_s9, %s639_s9, %s640_s10  }
   0x7   :  { %s641_s11 = smov [#allocation2]   ;;  %s46_s15 = sshll.u32 %s713_s2, 4  ;;  %s47_s15 = int_to_ptr.hbm [resolvable:$true] %s46_s15 }
   0x8   :  { %s22_s12 = sshll.u32 %s641_s11, 4  ;;  %s59_s17 = sshll.u32 %s714_s3, 4  ;;  %s23_s12 = int_to_ptr.vmem [resolvable:$true] %s22_s12  ;;  %s60_s17 = int_to_ptr.hbm [resolvable:$true] %s59_s17 }
   0x9   :  { %28 = dma.hbm_to_vmem [thread:$0]  %s21_s8, 128, %s23_s12, [#allocation3], %s639_s9, %s639_s9, %s640_s10  }
   0xa   :  { %s642_s18 = smov [#allocation7]   ;;  %s643_s0 = smov [#allocation8]  }
   0xb   :  { %s48_s19 = sshll.u32 %s642_s18, 4  ;;  %s61_s20 = sshll.u32 %s643_s0, 4  ;;  %s49_s19 = int_to_ptr.vmem [resolvable:$true] %s48_s19  ;;  %s62_s20 = int_to_ptr.vmem [resolvable:$true] %s61_s20 }
   0xc   :  { %54 = dma.hbm_to_vmem [thread:$0]  %s47_s15, 1024, %s49_s19, [#allocation6], %s639_s9, %s639_s9, %s640_s10  }
   0xd   :  { %67 = dma.hbm_to_vmem [thread:$0]  %s60_s17, 1024, %s62_s20, [#allocation9], %s639_s9, %s639_s9, %s640_s10  }
   0xe   :  { %630 = dma.done.wait [#allocation3], 128  }
   0xf   :  { %631 = vsyncadd [#allocation3], 4294967168 }
  0x10   :  { %632 = dma.done.wait [#allocation6], 2048  }
  0x11   :  { %633 = vsyncadd [#allocation6], 4294965248 }
  0x12   :  { %634 = dma.done.wait [#allocation9], 1024  }
  0x13   :  { %635 = vsyncadd [#allocation9], 4294966272  ;;  %v481_v0 = vld [vmem:[#allocation5 + $0x38] sm:$0xff]  ;;  %v480_v1 = vld [vmem:[#allocation5 + $0x30] sm:$0xff]  ;;  %s644_s24 = smov [#allocation10]   ;;  %s645_s28 = smov 128  }
  0x14   :  { %166 = vmatpush.bf16.msra.mxu0 %v481_v0  ;;  %v489_v2 = vld [vmem:[#allocation7 + $0x38] sm:$0xff]  ;;  %v488_v3 = vld [vmem:[#allocation7 + $0x30] sm:$0xff]  ;;  %v479_v4 = vld [vmem:[#allocation5 + $0x28] sm:$0xff]  ;;  %s356_s25 = sshll.u32 %s644_s24, 4  ;;  %s646_s29 = smov 8   ;;  %s357_s25 = int_to_ptr.vmem [resolvable:$true] %s356_s25 }
  0x15   :  { %251 = vmatpush.bf16.msra.mxu1 %v489_v2  ;;  %v487_v5 = vld [vmem:[#allocation7 + $0x28] sm:$0xff]  ;;  %v478_v6 = vld [vmem:[#allocation5 + $0x20] sm:$0xff]  ;;  %v477_v8 = vld [vmem:[#allocation5 + $0x18] sm:$0xff] }
  0x16   :  { %v486_v7 = vld [vmem:[#allocation7 + $0x20] sm:$0xff]  ;;  %v476_v9 = vld [vmem:[#allocation5 + $0x10] sm:$0xff]  ;;  %v475_v10 = vld [vmem:[#allocation5 + $0x8] sm:$0xff] }
  0x17   :  { %v474_v11 = vld [vmem:[#allocation5] sm:$0xff]  ;;  %v473_v12 = vld [vmem:[#allocation2] sm:$0xff]  ;;  %v484_v14 = vld [vmem:[#allocation7 + $0x10] sm:$0xff] }
  0x18   :  { %167 = vmatpush.bf16.msra.mxu0 %v480_v1  ;;  %v485_v13 = vld [vmem:[#allocation7 + $0x18] sm:$0xff]  ;;  %v483_v15 = vld [vmem:[#allocation7 + $0x8] sm:$0xff]  ;;  %v482_v16 = vld [vmem:[#allocation7] sm:$0xff] }
  0x19   :  { %252 = vmatpush.bf16.msra.mxu1 %v488_v3  ;;  %v497_v17 = vld [vmem:[#allocation8 + $0x38] sm:$0xff]  ;;  %v496_v18 = vld [vmem:[#allocation8 + $0x30] sm:$0xff]  ;;  %v495_v19 = vld [vmem:[#allocation8 + $0x28] sm:$0xff] }
  0x1a   :  { %336 = vmatpush.bf16.msra.mxu2 %v497_v17  ;;  %v494_v20 = vld [vmem:[#allocation8 + $0x20] sm:$0xff]  ;;  %v507_v22 = vld [vmem:[%s715_s4] ss:$0 sm:$0xff]  ;;  %v492_v30 = vld [vmem:[#allocation8 + $0x10] sm:$0xff] }
  0x1b   :  { %v493_v29 = vld [vmem:[#allocation8 + $0x18] sm:$0xff]  ;;  %v491_v31 = vld [vmem:[#allocation8 + $0x8] sm:$0xff]  ;;  %v490_v32 = vld [vmem:[#allocation8] sm:$0xff] }
  0x1c   :  { %168 = vmatpush.bf16.msra.mxu0 %v479_v4  ;;  %v508_v34 = vld [vmem:[%s716_s5] ss:$0 sm:$0xff]  ;;  %s358_s5 = sshll.u32 %s718_s7, 4  ;;  %s359_s5 = int_to_ptr.hbm [resolvable:$true] %s358_s5 }
  0x1d   :  { %253 = vmatpush.bf16.msra.mxu1 %v487_v5  ;;  %v509_v41 = vld [vmem:[%s717_s6] ss:$0 sm:$0xff] }
  0x1e   :  { %337 = vmatpush.bf16.msra.mxu2 %v496_v18 }
  0x20   :  { %169 = vmatpush.bf16.msra.mxu0 %v478_v6 }
  0x21   :  { %254 = vmatpush.bf16.msra.mxu1 %v486_v7 }
  0x22   :  { %338 = vmatpush.bf16.msra.mxu2 %v495_v19 }
  0x24   :  { %170 = vmatpush.bf16.msra.mxu0 %v477_v8 }
  0x25   :  { %255 = vmatpush.bf16.msra.mxu1 %v485_v13 }
  0x26   :  { %339 = vmatpush.bf16.msra.mxu2 %v494_v20 }
  0x28   :  { %171 = vmatpush.bf16.msra.mxu0 %v476_v9 }
  0x29   :  { %256 = vmatpush.bf16.msra.mxu1 %v484_v14 }
  0x2a   :  { %340 = vmatpush.bf16.msra.mxu2 %v493_v29 }
  0x2c   :  { %172 = vmatpush.bf16.msra.mxu0 %v475_v10 }
  0x2d   :  { %257 = vmatpush.bf16.msra.mxu1 %v483_v15 }
  0x2e   :  { %341 = vmatpush.bf16.msra.mxu2 %v492_v30 }
  0x30   :  { %173 = vmatpush.bf16.msra.mxu0 %v474_v11 }
  0x31   :  { %258 = vmatpush.bf16.msra.mxu1 %v482_v16 }
  0x32   :  { %342 = vmatpush.bf16.msra.mxu2 %v491_v31 }
  0x33   :  { %174 = vmatmul.bf16.vlgmr.msra.gmra.mxu0 %v473_v12 }
  0x36   :  { %343 = vmatpush.bf16.msra.mxu2 %v490_v32 }
  0xb0   :  { %v175_v21 = vpop.f32.mrf.mxu0 }
  0xb1   :  { %v176_v23 = vadd.f32 %v507_v22, %v175_v21 }
  0xb3   :  { %v180_v26 = vmax.f32 %v176_v23, 0.0 }
  0xb8   :  { %v177_v24 = vpop.f32.mrf.mxu0 }
  0xb9   :  { %v178_v25 = vadd.f32 %v507_v22, %v177_v24 }
  0xbb   :  { %v181_v27 = vmax.f32 %v178_v25, 0.0 }
  0xbd   :  { %v182_v28 = vpack.c.bf16 %v181_v27, %v180_v26 }
  0xbf   :  { %259 = vmatmul.bf16.vlgmr.msra.gmra.mxu1 %v182_v28 }
 0x13c   :  { %v260_v33 = vpop.f32.mrf.mxu1 }
 0x13d   :  { %v261_v35 = vadd.f32 %v508_v34, %v260_v33 }
 0x13f   :  { %v265_v38 = vmax.f32 %v261_v35, 0.0 }
 0x144   :  { %v262_v36 = vpop.f32.mrf.mxu1 }
 0x145   :  { %v263_v37 = vadd.f32 %v508_v34, %v262_v36 }
 0x147   :  { %v266_v39 = vmax.f32 %v263_v37, 0.0 }
 0x149   :  { %v267_v40 = vpack.c.bf16 %v266_v39, %v265_v38 }
 0x14b   :  { %344 = vmatmul.bf16.vlgmr.msra.gmra.mxu2 %v267_v40 }
 0x1ce   :  { %v345_v42 = vpop.f32.mrf.mxu2 }
 0x1cf   :  { %v346_v43 = vadd.f32 %v509_v41, %v345_v42 }
 0x1d1   :  { %350 = vst [vmem:[#allocation10] sm:$0xff] %v346_v43 }
 0x1d6   :  { %v347_v44 = vpop.f32.mrf.mxu2 }
 0x1d7   :  { %v348_v45 = vadd.f32 %v509_v41, %v347_v44 }
 0x1d9   :  { %351 = vst [vmem:[#allocation10 + $0x8] sm:$0xff] %v348_v45 }
 0x1da   :  { %364 = dma.vmem_to_hbm [thread:$0]  %s357_s25, 256, %s359_s5, [#allocation4], %s645_s28, %s645_s28, %s646_s29  }
 0x1db   :  { %636 = dma.done.wait [#allocation4], 256  }
 0x1dc   :  { %637 = vsyncadd [#allocation4], 4294967040 }
 0x1dd   :  { %369 = vsyncpa [#allocation3], 1 }
 0x1de   :  { %370 = vsyncpa [#allocation6], 1 }
 0x1df   :  { %371 = vsyncpa [#allocation9], 1 }
 0x1e0   :  { %372 = vsyncpa [#allocation4], 1 }

// kernel: tpu_custom_call.1
= control target key start
LH: loop header
LB: loop body
LE: loop exit
PB: predicated region body
PF: predicated region fallthrough
CT: control target
= control target key end

     0   :  { %12 = vsyncpa [#allocation3], 0  ;;  %s711_s0 = inlined_call_operand.hbm [shape: bf16[16,128], index: 0, kind: input, shape index: {}]   ;;  %s712_s1 = inlined_call_operand.hbm [shape: bf16[128,128], index: 1, kind: input, shape index: {}]   ;;  %s713_s2 = inlined_call_operand.hbm [shape: bf16[128,128], index: 2, kind: input, shape index: {}]   ;;  %s714_s3 = inlined_call_operand.hbm [shape: bf16[128,128], index: 3, kind: input, shape index: {}]   ;;  %s715_s4 = inlined_call_operand.vmem [shape: f32[1,128], index: 4, kind: input, shape index: {}]   ;;  %s716_s5 = inlined_call_operand.vmem [shape: f32[1,128], index: 5, kind: input, shape index: {}]   ;;  %s717_s6 = inlined_call_operand.vmem [shape: f32[1,128], index: 6, kind: input, shape index: {}]   ;;  %s718_s7 = inlined_call_operand.hbm [shape: f32[16,128], index: 7, kind: output, shape index: {}]  }
   0x1   :  { %13 = vsyncpa [#allocation6], 0 }
   0x2   :  { %14 = vsyncpa [#allocation9], 0 }
   0x3   :  { %15 = vsyncpa [#allocation4], 0  ;;  %s33_s26 = sshll.u32 %s712_s1, 4  ;;  %s638_s27 = smov [#allocation5]   ;;  %s34_s26 = int_to_ptr.hbm [resolvable:$true] %s33_s26 }
   0x4   :  { %s35_s28 = sshll.u32 %s638_s27, 4  ;;  %s20_s8 = sshll.u32 %s711_s0, 4  ;;  %s36_s28 = int_to_ptr.vmem [resolvable:$true] %s35_s28  ;;  %s21_s8 = int_to_ptr.hbm [resolvable:$true] %s20_s8 }
   0x5   :  { %s639_s9 = smov 64   ;;  %s640_s10 = smov 4  }
   0x6   :  { %41 = dma.hbm_to_vmem [thread:$0]  %s34_s26, 1024, %s36_s28, [#allocation6], %s639_s9, %s639_s9, %s640_s10  }
   0x7   :  { %s641_s11 = smov [#allocation2]   ;;  %s46_s15 = sshll.u32 %s713_s2, 4  ;;  %s47_s15 = int_to_ptr.hbm [resolvable:$true] %s46_s15 }
   0x8   :  { %s22_s12 = sshll.u32 %s641_s11, 4  ;;  %s59_s17 = sshll.u32 %s714_s3, 4  ;;  %s23_s12 = int_to_ptr.vmem [resolvable:$true] %s22_s12  ;;  %s60_s17 = int_to_ptr.hbm [resolvable:$true] %s59_s17 }
   0x9   :  { %28 = dma.hbm_to_vmem [thread:$0]  %s21_s8, 128, %s23_s12, [#allocation3], %s639_s9, %s639_s9, %s640_s10  }
   0xa   :  { %s642_s18 = smov [#allocation7]   ;;  %s643_s0 = smov [#allocation8]  }
   0xb   :  { %s48_s19 = sshll.u32 %s642_s18, 4  ;;  %s61_s20 = sshll.u32 %s643_s0, 4  ;;  %s49_s19 = int_to_ptr.vmem [resolvable:$true] %s48_s19  ;;  %s62_s20 = int_to_ptr.vmem [resolvable:$true] %s61_s20 }
   0xc   :  { %54 = dma.hbm_to_vmem [thread:$0]  %s47_s15, 1024, %s49_s19, [#allocation6], %s639_s9, %s639_s9, %s640_s10  }
   0xd   :  { %67 = dma.hbm_to_vmem [thread:$0]  %s60_s17, 1024, %s62_s20, [#allocation9], %s639_s9, %s639_s9, %s640_s10  }
   0xe   :  { %630 = dma.done.wait [#allocation3], 128  }
   0xf   :  { %631 = vsyncadd [#allocation3], 4294967168 }
  0x10   :  { %632 = dma.done.wait [#allocation6], 2048  }
  0x11   :  { %633 = vsyncadd [#allocation6], 4294965248 }
  0x12   :  { %634 = dma.done.wait [#allocation9], 1024  }
  0x13   :  { %635 = vsyncadd [#allocation9], 4294966272  ;;  %v481_v0 = vld [vmem:[#allocation5 + $0x38] sm:$0xff]  ;;  %v480_v1 = vld [vmem:[#allocation5 + $0x30] sm:$0xff]  ;;  %s644_s24 = smov [#allocation10]   ;;  %s645_s28 = smov 128  }
  0x14   :  { %166 = vmatpush.bf16.msra.mxu0 %v481_v0  ;;  %v489_v2 = vld [vmem:[#allocation7 + $0x38] sm:$0xff]  ;;  %v488_v3 = vld [vmem:[#allocation7 + $0x30] sm:$0xff]  ;;  %v479_v4 = vld [vmem:[#allocation5 + $0x28] sm:$0xff]  ;;  %s356_s25 = sshll.u32 %s644_s24, 4  ;;  %s646_s29 = smov 8   ;;  %s357_s25 = int_to_ptr.vmem [resolvable:$true] %s356_s25 }
  0x15   :  { %251 = vmatpush.bf16.msra.mxu1 %v489_v2  ;;  %v487_v5 = vld [vmem:[#allocation7 + $0x28] sm:$0xff]  ;;  %v478_v6 = vld [vmem:[#allocation5 + $0x20] sm:$0xff]  ;;  %v477_v8 = vld [vmem:[#allocation5 + $0x18] sm:$0xff] }
  0x16   :  { %v486_v7 = vld [vmem:[#allocation7 + $0x20] sm:$0xff]  ;;  %v476_v9 = vld [vmem:[#allocation5 + $0x10] sm:$0xff]  ;;  %v475_v10 = vld [vmem:[#allocation5 + $0x8] sm:$0xff] }
  0x17   :  { %v474_v11 = vld [vmem:[#allocation5] sm:$0xff]  ;;  %v473_v12 = vld [vmem:[#allocation2] sm:$0xff]  ;;  %v484_v14 = vld [vmem:[#allocation7 + $0x10] sm:$0xff] }
  0x18   :  { %167 = vmatpush.bf16.msra.mxu0 %v480_v1  ;;  %v485_v13 = vld [vmem:[#allocation7 + $0x18] sm:$0xff]  ;;  %v483_v15 = vld [vmem:[#allocation7 + $0x8] sm:$0xff]  ;;  %v482_v16 = vld [vmem:[#allocation7] sm:$0xff] }
  0x19   :  { %252 = vmatpush.bf16.msra.mxu1 %v488_v3  ;;  %v497_v17 = vld [vmem:[#allocation8 + $0x38] sm:$0xff]  ;;  %v496_v18 = vld [vmem:[#allocation8 + $0x30] sm:$0xff]  ;;  %v495_v19 = vld [vmem:[#allocation8 + $0x28] sm:$0xff] }
  0x1a   :  { %336 = vmatpush.bf16.msra.mxu2 %v497_v17  ;;  %v494_v20 = vld [vmem:[#allocation8 + $0x20] sm:$0xff]  ;;  %v507_v22 = vld [vmem:[%s715_s4] ss:$0 sm:$0xff]  ;;  %v492_v30 = vld [vmem:[#allocation8 + $0x10] sm:$0xff] }
  0x1b   :  { %v493_v29 = vld [vmem:[#allocation8 + $0x18] sm:$0xff]  ;;  %v491_v31 = vld [vmem:[#allocation8 + $0x8] sm:$0xff]  ;;  %v490_v32 = vld [vmem:[#allocation8] sm:$0xff] }
  0x1c   :  { %168 = vmatpush.bf16.msra.mxu0 %v479_v4  ;;  %v508_v34 = vld [vmem:[%s716_s5] ss:$0 sm:$0xff]  ;;  %s358_s5 = sshll.u32 %s718_s7, 4  ;;  %s359_s5 = int_to_ptr.hbm [resolvable:$true] %s358_s5 }
  0x1d   :  { %253 = vmatpush.bf16.msra.mxu1 %v487_v5  ;;  %v509_v41 = vld [vmem:[%s717_s6] ss:$0 sm:$0xff] }
  0x1e   :  { %337 = vmatpush.bf16.msra.mxu2 %v496_v18 }
  0x20   :  { %169 = vmatpush.bf16.msra.mxu0 %v478_v6 }
  0x21   :  { %254 = vmatpush.bf16.msra.mxu1 %v486_v7 }
  0x22   :  { %338 = vmatpush.bf16.msra.mxu2 %v495_v19 }
  0x24   :  { %170 = vmatpush.bf16.msra.mxu0 %v477_v8 }
  0x25   :  { %255 = vmatpush.bf16.msra.mxu1 %v485_v13 }
  0x26   :  { %339 = vmatpush.bf16.msra.mxu2 %v494_v20 }
  0x28   :  { %171 = vmatpush.bf16.msra.mxu0 %v476_v9 }
  0x29   :  { %256 = vmatpush.bf16.msra.mxu1 %v484_v14 }
  0x2a   :  { %340 = vmatpush.bf16.msra.mxu2 %v493_v29 }
  0x2c   :  { %172 = vmatpush.bf16.msra.mxu0 %v475_v10 }
  0x2d   :  { %257 = vmatpush.bf16.msra.mxu1 %v483_v15 }
  0x2e   :  { %341 = vmatpush.bf16.msra.mxu2 %v492_v30 }
  0x30   :  { %173 = vmatpush.bf16.msra.mxu0 %v474_v11 }
  0x31   :  { %258 = vmatpush.bf16.msra.mxu1 %v482_v16 }
  0x32   :  { %342 = vmatpush.bf16.msra.mxu2 %v491_v31 }
  0x33   :  { %174 = vmatmul.bf16.vlgmr.msra.gmra.mxu0 %v473_v12 }
  0x36   :  { %343 = vmatpush.bf16.msra.mxu2 %v490_v32 }
  0xb0   :  { %v175_v21 = vpop.f32.mrf.mxu0 }
  0xb1   :  { %v176_v23 = vadd.f32 %v507_v22, %v175_v21 }
  0xb3   :  { %v180_v26 = vmax.f32 %v176_v23, 0.0 }
  0xb8   :  { %v177_v24 = vpop.f32.mrf.mxu0 }
  0xb9   :  { %v178_v25 = vadd.f32 %v507_v22, %v177_v24 }
  0xbb   :  { %v181_v27 = vmax.f32 %v178_v25, 0.0 }
  0xbd   :  { %v182_v28 = vpack.c.bf16 %v181_v27, %v180_v26 }
  0xbf   :  { %259 = vmatmul.bf16.vlgmr.msra.gmra.mxu1 %v182_v28 }
 0x13c   :  { %v260_v33 = vpop.f32.mrf.mxu1 }
 0x13d   :  { %v261_v35 = vadd.f32 %v508_v34, %v260_v33 }
 0x13f   :  { %v265_v38 = vmax.f32 %v261_v35, 0.0 }
 0x144   :  { %v262_v36 = vpop.f32.mrf.mxu1 }
 0x145   :  { %v263_v37 = vadd.f32 %v508_v34, %v262_v36 }
 0x147   :  { %v266_v39 = vmax.f32 %v263_v37, 0.0 }
 0x149   :  { %v267_v40 = vpack.c.bf16 %v266_v39, %v265_v38 }
 0x14b   :  { %344 = vmatmul.bf16.vlgmr.msra.gmra.mxu2 %v267_v40 }
 0x1ce   :  { %v345_v42 = vpop.f32.mrf.mxu2 }
 0x1cf   :  { %v346_v43 = vadd.f32 %v509_v41, %v345_v42 }
 0x1d1   :  { %350 = vst [vmem:[#allocation10] sm:$0xff] %v346_v43 }
 0x1d6   :  { %v347_v44 = vpop.f32.mrf.mxu2 }
 0x1d7   :  { %v348_v45 = vadd.f32 %v509_v41, %v347_v44 }
 0x1d9   :  { %351 = vst [vmem:[#allocation10 + $0x8] sm:$0xff] %v348_v45 }
 0x1da   :  { %364 = dma.vmem_to_hbm [thread:$0]  %s357_s25, 256, %s359_s5, [#allocation4], %s645_s28, %s645_s28, %s646_s29  }
 0x1db   :  { %636 = dma.done.wait [#allocation4], 256  }
 0x1dc   :  { %637 = vsyncadd [#allocation4], 4294967040 }
 0x1dd   :  { %369 = vsyncpa [#allocation3], 1 }
 0x1de   :  { %370 = vsyncpa [#allocation6], 1 }
 0x1df   :  { %371 = vsyncpa [#allocation9], 1 }
 0x1e0   :  { %372 = vsyncpa [#allocation4], 1 }

</bundles_post_ra>
